<compile_context>
chip_gen: v7x
topology: tpu7x:2x2x1
jax: 0.10.0
libtpu: 0.0.40
codegen_flags: <defaults>
</compile_context>

<pallas_src>
import jax
import jax.numpy as jnp
from jax import lax
from jax.experimental import pallas as pl
from jax.experimental.pallas import tpu as pltpu

_LANES = 128
_SUBLANES = 8
_TARGET_D_TILE = 8192                    # max feature columns per D tile
_MAX_BLOCK_BYTES = 2 * 1024 * 1024       # per input, per pipeline buffer
_MAX_BATCH_BLOCK = 2048                  # keeps output/accumulator blocks small
_VMEM_LIMIT_BYTES = 32 * 1024 * 1024
_SMALL_PROBLEM_BYTES = 256 * 1024        # below this, fused XLA beats any kernel


def _round_up(x, m):
    return (x + m - 1) // m * m


def _gmn_loss_pallas(g1, g2, g3, gamma, *, batch_block=None, d_tile=None):
    """Pallas path.  g1/g2/g3: (B, D) arrays (f32 or bf16).  Returns (B,) f32."""
    B, D = g1.shape
    gamma_f = float(gamma)
    itemsize = jnp.dtype(g1.dtype).itemsize

    # ---- D tiling: multiple of 128 when tiling; never round up a whole tile ----
    if d_tile is None:
        if D <= _TARGET_D_TILE:
            d_tile = D
        else:
            n_d = pl.cdiv(D, _TARGET_D_TILE)
            d_tile = _round_up(pl.cdiv(D, n_d), _LANES)
    else:
        d_tile = min(int(d_tile), D)
        if d_tile < D:
            d_tile = max(_LANES, (d_tile // _LANES) * _LANES)
    n_d = pl.cdiv(D, d_tile)
    mask_tail = (D % d_tile) != 0            # only possible when n_d > 1

    # ---- batch blocking: fill ~_MAX_BLOCK_BYTES per input per buffer ----
    max_rows = max(1, (_MAX_BLOCK_BYTES // itemsize) // d_tile)
    max_rows = min(max_rows, _MAX_BATCH_BLOCK)
    if batch_block is None:
        batch_block = max_rows
    batch_block = int(batch_block)
    if batch_block >= B:
        batch_block = B                      # == full array dim -> always legal
    else:
        batch_block = max(_SUBLANES, (batch_block // _SUBLANES) * _SUBLANES)
        batch_block = min(batch_block, B)
    n_b = pl.cdiv(B, batch_block)

    n_full = d_tile // _LANES                # full 128-column chunks per tile
    rem = d_tile % _LANES                    # ragged tail columns (only if n_d == 1)

    def kernel(g1_ref, g2_ref, g3_ref, out_ref, acc12_ref, acc13_ref):
        di = pl.program_id(1)

        @pl.when(di == 0)
        def _init():
            acc12_ref[...] = jnp.zeros_like(acc12_ref)
            acc13_ref[...] = jnp.zeros_like(acc13_ref)

        p12 = acc12_ref[...]
        p13 = acc13_ref[...]

        if mask_tail or rem:
            lane = lax.broadcasted_iota(jnp.int32, (batch_block, _LANES), 1)
        col0 = di * d_tile                   # global column offset of this tile

        # Lane-preserving accumulation over 128-column chunks (stays in vregs).
        for j in range(n_full):
            sl = slice(j * _LANES, (j + 1) * _LANES)
            a = g1_ref[:, sl].astype(jnp.float32)
            d12 = a - g2_ref[:, sl].astype(jnp.float32)
            d13 = a - g3_ref[:, sl].astype(jnp.float32)
            s12 = d12 * d12
            s13 = d13 * d13
            if mask_tail:
                valid = (col0 + j * _LANES + lane) < D
                s12 = jnp.where(valid, s12, 0.0)
                s13 = jnp.where(valid, s13, 0.0)
            p12 = p12 + s12
            p13 = p13 + s13

        # Ragged remainder (< 128 columns); only occurs when d_tile == D (n_d == 1).
        if rem:
            sl = slice(n_full * _LANES, d_tile)
            a = g1_ref[:, sl].astype(jnp.float32)
            d12 = a - g2_ref[:, sl].astype(jnp.float32)
            d13 = a - g3_ref[:, sl].astype(jnp.float32)
            t12 = jnp.sum(d12 * d12, axis=1, keepdims=True)      # (BB, 1)
            t13 = jnp.sum(d13 * d13, axis=1, keepdims=True)
            p12 = p12 + jnp.where(lane == 0, t12, 0.0)
            p13 = p13 + jnp.where(lane == 0, t13, 0.0)

        acc12_ref[...] = p12
        acc13_ref[...] = p13

        @pl.when(di == n_d - 1)
        def _finalize():
            ssq12 = jnp.sum(acc12_ref[...], axis=1, keepdims=True)   # (BB, 1)
            ssq13 = jnp.sum(acc13_ref[...], axis=1, keepdims=True)
            loss = jnp.maximum(
                jnp.sqrt(ssq12) - jnp.sqrt(ssq13) + jnp.float32(gamma_f),
                jnp.float32(0.0))
            out_ref[...] = jnp.broadcast_to(loss, (batch_block, _LANES))

    in_spec = pl.BlockSpec((batch_block, d_tile), lambda bi, di: (bi, di))
    out_spec = pl.BlockSpec((batch_block, _LANES), lambda bi, di: (bi, 0))

    out = pl.pallas_call(
        kernel,
        out_shape=jax.ShapeDtypeStruct((B, _LANES), jnp.float32),
        grid_spec=pltpu.PrefetchScalarGridSpec(
            num_scalar_prefetch=0,
            grid=(n_b, n_d),
            in_specs=[in_spec, in_spec, in_spec],
            out_specs=out_spec,
            scratch_shapes=[
                pltpu.VMEM((batch_block, _LANES), jnp.float32),
                pltpu.VMEM((batch_block, _LANES), jnp.float32),
            ],
        ),
        compiler_params=pltpu.CompilerParams(
            dimension_semantics=("parallel", "arbitrary"),
            vmem_limit_bytes=_VMEM_LIMIT_BYTES),
    )(g1, g2, g3)
    return out[:, 0]


def gmn_loss_ref(g1_pred, g2_pred, g3_pred, gamma):
    """Pure-JAX reference matching GMN_loss.forward for one triplet."""
    d = g1_pred.shape[-1]
    g1 = jnp.asarray(g1_pred, jnp.float32).reshape(d)
    g2 = jnp.asarray(g2_pred, jnp.float32).reshape(d)
    g3 = jnp.asarray(g3_pred, jnp.float32).reshape(d)
    loss = (jnp.sqrt(jnp.sum((g1 - g2) ** 2))
            - jnp.sqrt(jnp.sum((g1 - g3) ** 2))
            + jnp.float32(gamma))
    return jnp.maximum(jnp.float32(0.0), loss)


def gmn_loss_batched(g1_pred, g2_pred, g3_pred, gamma, *,
                     batch_block=None, d_tile=None, force_pallas=False):
    """Batched triplet margin loss.  Inputs (..., D) flattened to (B, D); returns (B,) f32."""
    g1 = jnp.asarray(g1_pred)
    g2 = jnp.asarray(g2_pred)
    g3 = jnp.asarray(g3_pred)
    D = g1.shape[-1]
    # Keep bf16 inputs in bf16 to HBM (bandwidth win); everything else goes f32.
    dt = g1.dtype if g1.dtype in (jnp.float32, jnp.bfloat16) else jnp.float32
    g1 = g1.reshape(-1, D).astype(dt)
    g2 = g2.reshape(-1, D).astype(dt)
    g3 = g3.reshape(-1, D).astype(dt)
    B = g1.shape[0]

    total_bytes = 3 * B * D * jnp.dtype(dt).itemsize
    if not force_pallas and total_bytes < _SMALL_PROBLEM_BYTES:
        # Launch/DMA overhead dominates for tiny inputs; fused XLA is strictly faster.
        return jax.vmap(lambda a, b, c: gmn_loss_ref(a, b, c, gamma))(g1, g2, g3)
    return _gmn_loss_pallas(g1, g2, g3, gamma,
                            batch_block=batch_block, d_tile=d_tile)


def gmn_loss(g1_pred, g2_pred, g3_pred, gamma, *, force_pallas=False):
    """Matches GMN_loss.forward: single triplet, returns a scalar loss."""
    d = jnp.asarray(g1_pred).shape[-1]
    g1 = jnp.asarray(g1_pred).reshape(1, d)
    g2 = jnp.asarray(g2_pred).reshape(1, d)
    g3 = jnp.asarray(g3_pred).reshape(1, d)
    return gmn_loss_batched(g1, g2, g3, gamma, force_pallas=force_pallas)[0]


if __name__ == "__main__":
    key = jax.random.PRNGKey(0)
    gamma = 0.5

    # Case 1: exactly the PyTorch module's usage (single tiny triplet, D = 4).
    g1 = jnp.array([1.0, 2.0, 3.0, 4.0], jnp.float32)
    g2 = jnp.array([2.0, 3.0, 4.0, 5.0], jnp.float32)
    k, key = jax.random.split(key)
    g3 = jax.random.normal(k, (4,), jnp.float32)
    ref1 = gmn_loss_ref(g1, g2, g3, gamma)
    out_auto = gmn_loss(g1, g2, g3, gamma)                        # auto -> fused XLA
    out_pal = gmn_loss(g1, g2, g3, gamma, force_pallas=True)      # exercise the kernel
    jax.block_until_ready((out_auto, out_pal))
    assert jnp.allclose(out_auto, ref1, atol=1e-5, rtol=1e-5), (out_auto, ref1)
    assert jnp.allclose(out_pal, ref1, atol=1e-5, rtol=1e-5), (out_pal, ref1)

    def batched_ref(a, b, c):
        return jax.vmap(lambda x, y, z: gmn_loss_ref(x, y, z, gamma))(a, b, c)

    # Case 2: batched, D multiple of 128 (lane-chunked accumulation path).
    B, D = 8, 256
    k1, k2, k3, key = jax.random.split(key, 4)
    a = jax.random.normal(k1, (B, D), jnp.float32)
    b = jax.random.normal(k2, (B, D), jnp.float32)
    c = jax.random.normal(k3, (B, D), jnp.float32)
    out = gmn_loss_batched(a, b, c, gamma, force_pallas=True)
    jax.block_until_ready(out)
    assert jnp.allclose(out, batched_ref(a, b, c), atol=1e-4, rtol=1e-5)

    # Case 3: ragged D, single D tile (remainder columns folded into lane 0).
    B, D = 4, 300
    k1, k2, k3, key = jax.random.split(key, 4)
    a = jax.random.normal(k1, (B, D), jnp.float32)
    b = jax.random.normal(k2, (B, D), jnp.float32)
    c = jax.random.normal(k3, (B, D), jnp.float32)
    out = gmn_loss_batched(a, b, c, gamma, force_pallas=True)
    jax.block_until_ready(out)
    assert jnp.allclose(out, batched_ref(a, b, c), atol=1e-4, rtol=1e-5)

    # Case 4: forced D tiling with a ragged last tile (in-kernel tail masking).
    B, D = 2, 448
    k1, k2, k3, key = jax.random.split(key, 4)
    a = jax.random.normal(k1, (B, D), jnp.float32)
    b = jax.random.normal(k2, (B, D), jnp.float32)
    c = jax.random.normal(k3, (B, D), jnp.float32)
    out = gmn_loss_batched(a, b, c, gamma, d_tile=256, force_pallas=True)
    jax.block_until_ready(out)
    assert jnp.allclose(out, batched_ref(a, b, c), atol=1e-4, rtol=1e-5)

    # Case 5: batch block that does not divide B (clipped partial-block writes).
    B, D = 10, 256
    k1, k2, k3, key = jax.random.split(key, 4)
    a = jax.random.normal(k1, (B, D), jnp.float32)
    b = jax.random.normal(k2, (B, D), jnp.float32)
    c = jax.random.normal(k3, (B, D), jnp.float32)
    out = gmn_loss_batched(a, b, c, gamma, batch_block=8, force_pallas=True)
    jax.block_until_ready(out)
    assert jnp.allclose(out, batched_ref(a, b, c), atol=1e-4, rtol=1e-5)

    # Case 6: bf16 inputs (HBM traffic halved), f32 accumulation in-kernel.
    B, D = 8, 384
    k1, k2, k3, key = jax.random.split(key, 4)
    a = jax.random.normal(k1, (B, D), jnp.float32).astype(jnp.bfloat16)
    b = jax.random.normal(k2, (B, D), jnp.float32).astype(jnp.bfloat16)
    c = jax.random.normal(k3, (B, D), jnp.float32).astype(jnp.bfloat16)
    out = gmn_loss_batched(a, b, c, gamma, force_pallas=True)
    jax.block_until_ready(out)
    assert jnp.allclose(out, batched_ref(a, b, c), atol=1e-4, rtol=1e-4)

    print("KERNEL_OK")
</pallas_src>

<mosaic_0001>
module attributes {stable_mosaic.version = 11 : i64} {
  func.func @kernel(%arg0: i32, %arg1: i32, %arg2: memref<1x4xf32, #tpu.memory_space<vmem>>, %arg3: memref<1x4xf32, #tpu.memory_space<vmem>>, %arg4: memref<1x4xf32, #tpu.memory_space<vmem>>, %arg5: memref<1x128xf32, #tpu.memory_space<vmem>>, %arg6: memref<1x128xf32, #tpu.memory_space<vmem>>, %arg7: memref<1x128xf32, #tpu.memory_space<vmem>>) attributes {dimension_semantics = [#tpu.dimension_semantics<parallel>, #tpu.dimension_semantics<arbitrary>], iteration_bounds = array<i64: 1, 1>, scalar_prefetch = 0 : i64, scratch_operands = 2 : i64, tpu.core_type = #tpu.core_type<tc>, window_params = [{transform_indices = @transform_0, window_bounds = array<i64: 1, 4>}, {transform_indices = @transform_1, window_bounds = array<i64: 1, 4>}, {transform_indices = @transform_2, window_bounds = array<i64: 1, 4>}, {transform_indices = @transform_3, window_bounds = array<i64: 1, 128>}]} {
    %c0_i32 = arith.constant 0 : i32
    %0 = arith.cmpi eq, %arg1, %c0_i32 : i32
    %1 = arith.extui %0 : i1 to i32
    %c0_i32_0 = arith.constant 0 : i32
    %2 = arith.cmpi ne, %1, %c0_i32_0 : i32
    scf.if %2 {
      %cst_21 = arith.constant 0.000000e+00 : f32
      %36 = vector.broadcast %cst_21 : f32 to vector<1x128xf32>
      %c0_22 = arith.constant 0 : index
      %c0_23 = arith.constant 0 : index
      %37 = vector.load %arg6[%c0_22, %c0_23] : memref<1x128xf32, #tpu.memory_space<vmem>>, vector<1x128xf32>
      tpu.vector_store %arg6[%c0_22, %c0_23], %36 {strides = array<i32>} : memref<1x128xf32, #tpu.memory_space<vmem>>, vector<1x128xf32>,
      %cst_24 = arith.constant 0.000000e+00 : f32
      %38 = vector.broadcast %cst_24 : f32 to vector<1x128xf32>
      %c0_25 = arith.constant 0 : index
      %c0_26 = arith.constant 0 : index
      %39 = vector.load %arg7[%c0_25, %c0_26] : memref<1x128xf32, #tpu.memory_space<vmem>>, vector<1x128xf32>
      tpu.vector_store %arg7[%c0_25, %c0_26], %38 {strides = array<i32>} : memref<1x128xf32, #tpu.memory_space<vmem>>, vector<1x128xf32>,
    } else {
    }
    %c0 = arith.constant 0 : index
    %c0_1 = arith.constant 0 : index
    %3 = vector.load %arg6[%c0, %c0_1] : memref<1x128xf32, #tpu.memory_space<vmem>>, vector<1x128xf32>
    %c0_2 = arith.constant 0 : index
    %c0_3 = arith.constant 0 : index
    %4 = vector.load %arg7[%c0_2, %c0_3] : memref<1x128xf32, #tpu.memory_space<vmem>>, vector<1x128xf32>
    %5 = tpu.iota {dimensions = array<i32: 1>} : vector<1x128xi32>
    %c0_4 = arith.constant 0 : index
    %c0_5 = arith.constant 0 : index
    %6 = vector.load %arg2[%c0_4, %c0_5] : memref<1x4xf32, #tpu.memory_space<vmem>>, vector<1x4xf32>
    %c0_6 = arith.constant 0 : index
    %c0_7 = arith.constant 0 : index
    %7 = vector.load %arg3[%c0_6, %c0_7] : memref<1x4xf32, #tpu.memory_space<vmem>>, vector<1x4xf32>
    %8 = arith.subf %6, %7 : vector<1x4xf32>
    %c0_8 = arith.constant 0 : index
    %c0_9 = arith.constant 0 : index
    %9 = vector.load %arg4[%c0_8, %c0_9] : memref<1x4xf32, #tpu.memory_space<vmem>>, vector<1x4xf32>
    %10 = arith.subf %6, %9 : vector<1x4xf32>
    %11 = arith.mulf %8, %8 : vector<1x4xf32>
    %cst = arith.constant dense<0.000000e+00> : vector<1xf32>
    %12 = vector.multi_reduction <add>, %11, %cst [1] : vector<1x4xf32> to vector<1xf32>
    %13 = vector.shape_cast %12 : vector<1xf32> to vector<1x1xf32>
    %14 = arith.mulf %10, %10 : vector<1x4xf32>
    %cst_10 = arith.constant dense<0.000000e+00> : vector<1xf32>
    %15 = vector.multi_reduction <add>, %14, %cst_10 [1] : vector<1x4xf32> to vector<1xf32>
    %16 = vector.shape_cast %15 : vector<1xf32> to vector<1x1xf32>
    %c0_i32_11 = arith.constant 0 : i32
    %17 = vector.broadcast %c0_i32_11 : i32 to vector<1x128xi32>
    %18 = arith.cmpi eq, %5, %17 : vector<1x128xi32>
    %cst_12 = arith.constant 0.000000e+00 : f32
    %19 = vector.shape_cast %13 : vector<1x1xf32> to vector<1x1xf32>
    %20 = vector.broadcast %19 : vector<1x1xf32> to vector<1x128xf32>
    %21 = vector.broadcast %cst_12 : f32 to vector<1x128xf32>
    %22 = arith.select %18, %20, %21 : vector<1x128xi1>, vector<1x128xf32>
    %23 = arith.addf %3, %22 : vector<1x128xf32>
    %c0_i32_13 = arith.constant 0 : i32
    %24 = vector.broadcast %c0_i32_13 : i32 to vector<1x128xi32>
    %25 = arith.cmpi eq, %5, %24 : vector<1x128xi32>
    %cst_14 = arith.constant 0.000000e+00 : f32
    %26 = vector.shape_cast %16 : vector<1x1xf32> to vector<1x1xf32>
    %27 = vector.broadcast %26 : vector<1x1xf32> to vector<1x128xf32>
    %28 = vector.broadcast %cst_14 : f32 to vector<1x128xf32>
    %29 = arith.select %25, %27, %28 : vector<1x128xi1>, vector<1x128xf32>
    %30 = arith.addf %4, %29 : vector<1x128xf32>
    %c0_15 = arith.constant 0 : index
    %c0_16 = arith.constant 0 : index
    %31 = vector.load %arg6[%c0_15, %c0_16] : memref<1x128xf32, #tpu.memory_space<vmem>>, vector<1x128xf32>
    tpu.vector_store %arg6[%c0_15, %c0_16], %23 {strides = array<i32>} : memref<1x128xf32, #tpu.memory_space<vmem>>, vector<1x128xf32>,
    %c0_17 = arith.constant 0 : index
    %c0_18 = arith.constant 0 : index
    %32 = vector.load %arg7[%c0_17, %c0_18] : memref<1x128xf32, #tpu.memory_space<vmem>>, vector<1x128xf32>
    tpu.vector_store %arg7[%c0_17, %c0_18], %30 {strides = array<i32>} : memref<1x128xf32, #tpu.memory_space<vmem>>, vector<1x128xf32>,
    %c0_i32_19 = arith.constant 0 : i32
    %33 = arith.cmpi eq, %arg1, %c0_i32_19 : i32
    %34 = arith.extui %33 : i1 to i32
    %c0_i32_20 = arith.constant 0 : i32
    %35 = arith.cmpi ne, %34, %c0_i32_20 : i32
    scf.if %35 {
      %c0_21 = arith.constant 0 : index
      %c0_22 = arith.constant 0 : index
      %36 = vector.load %arg6[%c0_21, %c0_22] : memref<1x128xf32, #tpu.memory_space<vmem>>, vector<1x128xf32>
      %cst_23 = arith.constant dense<0.000000e+00> : vector<1xf32>
      %37 = vector.multi_reduction <add>, %36, %cst_23 [1] : vector<1x128xf32> to vector<1xf32>
      %38 = vector.shape_cast %37 : vector<1xf32> to vector<1x1xf32>
      %c0_24 = arith.constant 0 : index
      %c0_25 = arith.constant 0 : index
      %39 = vector.load %arg7[%c0_24, %c0_25] : memref<1x128xf32, #tpu.memory_space<vmem>>, vector<1x128xf32>
      %cst_26 = arith.constant dense<0.000000e+00> : vector<1xf32>
      %40 = vector.multi_reduction <add>, %39, %cst_26 [1] : vector<1x128xf32> to vector<1xf32>
      %41 = vector.shape_cast %40 : vector<1xf32> to vector<1x1xf32>
      %42 = math.sqrt %38 : vector<1x1xf32>
      %43 = math.sqrt %41 : vector<1x1xf32>
      %44 = arith.subf %42, %43 : vector<1x1xf32>
      %cst_27 = arith.constant 5.000000e-01 : f32
      %45 = vector.broadcast %cst_27 : f32 to vector<1x1xf32>
      %46 = arith.addf %44, %45 : vector<1x1xf32>
      %cst_28 = arith.constant 0.000000e+00 : f32
      %47 = vector.broadcast %cst_28 : f32 to vector<1x1xf32>
      %48 = arith.maximumf %46, %47 : vector<1x1xf32>
      %49 = vector.shape_cast %48 : vector<1x1xf32> to vector<1x1xf32>
      %50 = vector.broadcast %49 : vector<1x1xf32> to vector<1x128xf32>
      %c0_29 = arith.constant 0 : index
      %c0_30 = arith.constant 0 : index
      %51 = vector.load %arg5[%c0_29, %c0_30] : memref<1x128xf32, #tpu.memory_space<vmem>>, vector<1x128xf32>
      tpu.vector_store %arg5[%c0_29, %c0_30], %50 {strides = array<i32>} : memref<1x128xf32, #tpu.memory_space<vmem>>, vector<1x128xf32>,
    } else {
    }
    return
  }
  func.func @transform_0(%arg0: i32, %arg1: i32) -> (i32, i32) {
    %c0_i32 = arith.constant 0 : i32
    return %arg0, %arg1 : i32, i32
  }
  func.func @transform_1(%arg0: i32, %arg1: i32) -> (i32, i32) {
    %c0_i32 = arith.constant 0 : i32
    return %arg0, %arg1 : i32, i32
  }
  func.func @transform_2(%arg0: i32, %arg1: i32) -> (i32, i32) {
    %c0_i32 = arith.constant 0 : i32
    return %arg0, %arg1 : i32, i32
  }
  func.func @transform_3(%arg0: i32, %arg1: i32) -> (i32, i32) {
    %c0_i32 = arith.constant 0 : i32
    %c0_i32_0 = arith.constant 0 : i32
    return %arg0, %c0_i32 : i32, i32
  }
}

</mosaic_0001>

<bundles_post_ra>
// kernel: tpu_custom_call.1
= control target key start
LH: loop header
LB: loop body
LE: loop exit
PB: predicated region body
PF: predicated region fallthrough
CT: control target
= control target key end

     0   :  { %8 = vsyncpa [#allocation5], 0  ;;  %s211_s0 = inlined_call_operand.hbm [shape: f32[1,4], index: 0, kind: input, shape index: {}]   ;;  %s212_s1 = inlined_call_operand.vmem [shape: f32[1,4], index: 1, kind: input, shape index: {}]   ;;  %s213_s2 = inlined_call_operand.vmem [shape: f32[1,4], index: 2, kind: input, shape index: {}]   ;;  %s214_s3 = inlined_call_operand.hbm [shape: f32[1,128], index: 3, kind: output, shape index: {}]  }
   0x1   :  { %9 = vsyncpa [#allocation6], 0  ;;  %s158_s12 = smov [#allocation4]   ;;  %s110_s16 = scalar_lea.hbm %s211_s0, 16 }
   0x2   :  { %s16_s13 = sshll.u32 %s158_s12, 4  ;;  %p111_p0 = scmp.ne.s32.totalorder %s211_s0, %s110_s16  ;;  %s17_s13 = int_to_ptr.vmem [resolvable:$true] %s16_s13 }
   0x3   :  { %p114_p1 = scmp.lt.u32.totalorder %s110_s16, %s211_s0 }
   0x5   :  { %p116_p2 = pnand %p114_p1, %p111_p0 }
   0x7   :  { %119 = shalt.err (!%p116_p2)
}
   0x8   :  { %s120_s21 = scalar_lea.vmem %s17_s13, 16  ;;  %s124_s22 = scalar_lea.vmem %s17_s13, 32 }
   0x9   :  { %p121_p3 = scmp.ne.s32.totalorder %s17_s13, %s120_s21  ;;  %p125_p4 = scmp.lt.s32.totalorder %s17_s13, %s17_s13 }
   0xa   :  { %p126_p5 = scmp.lt.s32.totalorder %s124_s22, %s120_s21 }
   0xc   :  { %p127_p6 = por %p126_p5, %p125_p4 }
   0xe   :  { %p128_p7 = pnand %p127_p6, %p121_p3 }
  0x10   :  { %131 = shalt.err (!%p128_p7)
}
  0x11   :  { %19 = dma.hbm_to_vmem [thread:$0]  %s211_s0, 16, %s17_s13, [#allocation5]  }
  0x12   :  { %154 = dma.done.wait [#allocation5], 16  }
  0x13   :  { %155 = vsyncadd [#allocation5], 4294967280  ;;  %v159_v0 = vmov 0.0   ;;  %v37_v1 = vld [vmem:[#allocation4] sm:$0x1]  ;;  %vm43_vm0 = vcmask 24576   ;;  %v35_v10 = vlaneseq }
  0x14   :  { %31 = vst [vmem:[#allocation2] sm:$0x1] %v159_v0  ;;  %32 = vst [vmem:[#allocation3] sm:$0x1] %v159_v0  ;;  %v38_v2 = vld [vmem:[%s212_s1] sm:$0x1] }
  0x15   :  { %v40_v3 = vld [vmem:[%s213_s2] sm:$0x1]  ;;  %v39_v4 = vsub.f32 %v37_v1, %v38_v2  ;;  %v36_v11 = vand.u32 127, %v35_v10  ;;  %vm62_vm2 = vcmask 1040384   ;;  %s160_s0 = smov [#allocation7]  }
  0x16   :  { %v41_v5 = vsub.f32 %v37_v1, %v40_v3  ;;  %s94_s1 = sshll.u32 %s160_s0, 4  ;;  %s95_s1 = int_to_ptr.vmem [resolvable:$true] %s94_s1 }
  0x17   :  { %v42_v6 = vmul.f32 %v39_v4, %v39_v4  ;;  %vm51_vm1 = vcmp.eq.s32.totalorder %v36_v11, 0  ;;  %s132_s2 = scalar_lea.vmem %s95_s1, 16  ;;  %s136_s29 = scalar_lea.vmem %s95_s1, 32 }
  0x18   :  { %v47_v7 = vmul.f32 %v41_v5, %v41_v5  ;;  %p133_p8 = scmp.ne.s32.totalorder %s95_s1, %s132_s2  ;;  %p137_p9 = scmp.lt.s32.totalorder %s95_s1, %s95_s1 }
  0x19   :  { %v44_v8 = vsel %vm43_vm0, %v42_v6, 0.0  ;;  %p138_p10 = scmp.lt.s32.totalorder %s136_s29, %s132_s2 }
  0x1a   :  { %45 = vadd.xlane.f32.xlu0 %v44_v8  ;;  %v48_v9 = vsel %vm43_vm0, %v47_v7, 0.0 }
  0x1b   :  { %v33_v12 = vld [vmem:[#allocation2] sm:$0x1]  ;;  %v34_v16 = vld [vmem:[#allocation3] sm:$0x1]  ;;  %p139_p11 = por %p138_p10, %p137_p9 }
  0x1d   :  { %p140_p12 = pnand %p139_p11, %p133_p8 }
  0x1e   :  { %49 = vadd.xlane.f32.xlu0 %v48_v9 }
  0xa7   :  { %v46_v13 = vpop.xlane.xlu0 %45 }
  0xa8   :  { %v52_v14 = vsel %vm51_vm1, %v46_v13, 0.0 }
  0xa9   :  { %v53_v15 = vadd.f32 %v52_v14, %v33_v12 }
  0xab   :  { %56 = vst [vmem:[#allocation2] sm:$0x1] %v53_v15  ;;  %v50_v17 = vpop.xlane.xlu0 %49 }
  0xac   :  { %v54_v18 = vsel %vm51_vm1, %v50_v17, 0.0 }
  0xad   :  { %v55_v19 = vadd.f32 %v54_v18, %v34_v16 }
  0xaf   :  { %57 = vst [vmem:[#allocation3] sm:$0x1] %v55_v19 }
  0xb2   :  { %v61_v20 = vld [vmem:[#allocation2] sm:$0x1] }
  0xb3   :  { %v63_v21 = vsel %vm62_vm2, %v61_v20, 0.0 }
  0xb4   :  { %64 = vadd.xlane.f32.xlu1 %v63_v21 }
  0xb6   :  { %v66_v22 = vld [vmem:[#allocation3] sm:$0x1] }
  0xb7   :  { %v67_v23 = vsel %vm62_vm2, %v66_v22, 0.0 }
  0xb8   :  { %68 = vadd.xlane.f32.xlu1 %v67_v23 }
 0x141   :  { %v65_v24 = vpop.xlane.xlu1 %64 }
 0x142   :  { %106 = vrsqrt.f32 %v65_v24  ;;  %vm72_vm3 = vcmp.eq.f32.partialorder %v65_v24, inf  ;;  %v75_v32 = vand.u32 2147483648, %v65_v24  ;;  %vm74_vm5 = vcmp.eq.f32.partialorder %v65_v24, 0.0 }
 0x145   :  { %v69_v25 = vpop.xlane.xlu1 %68 }
 0x146   :  { %108 = vrsqrt.f32 %v69_v25  ;;  %vm79_vm4 = vcmp.eq.f32.partialorder %v69_v25, inf  ;;  %v82_v31 = vand.u32 2147483648, %v69_v25  ;;  %vm81_vm6 = vcmp.eq.f32.partialorder %v69_v25, 0.0 }
 0x14c   :  { %v107_v26 = vpop.eup %106 }
 0x14d   :  { %v71_v27 = vmul.f32 %v107_v26, %v65_v24 }
 0x14f   :  { %v73_v30 = vsel %vm72_vm3, %v65_v24, %v71_v27 }
 0x150   :  { %v109_v28 = vpop.eup %108  ;;  %v76_v34 = vsel %vm74_vm5, %v75_v32, %v73_v30 }
 0x151   :  { %v78_v29 = vmul.f32 %v109_v28, %v69_v25 }
 0x153   :  { %v80_v33 = vsel %vm79_vm4, %v69_v25, %v78_v29 }
 0x154   :  { %v83_v35 = vsel %vm81_vm6, %v82_v31, %v80_v33 }
 0x155   :  { %v84_v36 = vsub.f32 %v76_v34, %v83_v35 }
 0x157   :  { %v85_v37 = vadd.f32 0.5, %v84_v36 }
 0x159   :  { %v86_v38 = vmax.f32 %v85_v37, 0.0 }
 0x15b   :  { %87 = vst [vmem:[#allocation7] sm:$0x1] %v86_v38 }
 0x15c   :  { %143 = shalt.err (!%p140_p12)
}
 0x15d   :  { %s144_s5 = scalar_lea.hbm %s214_s3, 16 }
 0x15e   :  { %p145_p13 = scmp.ne.s32.totalorder %s214_s3, %s144_s5  ;;  %p148_p0 = scmp.lt.u32.totalorder %s144_s5, %s214_s3 }
 0x160   :  { %p150_p1 = pnand %p148_p0, %p145_p13 }
 0x162   :  { %153 = shalt.err (!%p150_p1)
}
 0x163   :  { %97 = dma.vmem_to_hbm [thread:$0]  %s95_s1, 16, %s214_s3, [#allocation6]  }
 0x164   :  { %156 = dma.done.wait [#allocation6], 16  }
 0x165   :  { %157 = vsyncadd [#allocation6], 4294967280 }
 0x166   :  { %101 = vsyncpa [#allocation5], 1 }
 0x167   :  { %102 = vsyncpa [#allocation6], 1 }

</bundles_post_ra>
